<compile_context>
chip_gen: v6e
topology: v6e:2x2x1
jax: 0.10.0
libtpu: 0.0.40
codegen_flags: <defaults>
</compile_context>

<pallas_src>
import jax
import jax.numpy as jnp
from jax import lax
from jax.experimental import pallas as pl
from jax.experimental.pallas import tpu as pltpu

FEATURES = 42
HL1, HL2, HL3, HL4 = 64, 32, 16, 8
BN_EPS = 1e-5


def _round_up(n, m):
    return ((n + m - 1) // m) * m


def _make_kernel(bf16_elementwise):
    ew = jnp.bfloat16 if bf16_elementwise else jnp.float32

    def kernel(x_ref,
               w1_ref, b1_ref, w2_ref, b2_ref, w3_ref, b3_ref, w4_ref, b4_ref,
               w5_ref, b5_ref, o_ref):
        # x_ref: (TB, FEATURES) f32 — raw sample-major tile; cast to bf16 on-chip.
        xb = x_ref[...].astype(jnp.bfloat16)
        # Layer 1: contract x's feature axis against w1's "in" axis (trans_b style)
        # so the result is already feature-major (HL1, TB) — batch on the lane axis.
        a = lax.dot_general(w1_ref[...], xb,
                            dimension_numbers=(((1,), (1,)), ((), ())),
                            preferred_element_type=jnp.float32)
        h = jnp.maximum(a.astype(ew) + b1_ref[...], 0).astype(jnp.bfloat16)
        for w_ref, b_ref in ((w2_ref, b2_ref), (w3_ref, b3_ref), (w4_ref, b4_ref)):
            a = jnp.dot(w_ref[...], h, preferred_element_type=jnp.float32)
            h = jnp.maximum(a.astype(ew) + b_ref[...], 0).astype(jnp.bfloat16)
        # Final 8 -> 1 layer as VPU multiply + sublane reduce (skip the MXU for a
        # nearly empty tile).  w5 is stored as a (HL4, 1) column.
        z = jnp.sum(w5_ref[...] * h.astype(jnp.float32), axis=0, keepdims=True)
        z = z + b5_ref[...]
        # sigmoid(z) = 1 / (1 + exp(-z)); approx reciprocal rides the EUP slot.
        o_ref[...] = pl.reciprocal(1.0 + jnp.exp(-z), approx=True).astype(o_ref.dtype)

    return kernel


def _pick_tile(batch, block_rows):
    tb = _round_up(min(block_rows, max(batch, 1)), 128)
    # v7x has 2 TensorCores: keep >= 2 "parallel" grid steps when the batch is big
    # enough to matter instead of collapsing everything into one serial tile.
    if batch > 256 and pl.cdiv(batch, tb) < 2:
        tb = _round_up(pl.cdiv(batch, 2), 128)
    return tb


def simplenet_forward(x, params, *, block_rows=8192, bf16_elementwise=False,
                      out_dtype=jnp.bfloat16):
    """SimpleNet forward.  x: (B, FEATURES) f32 -> (B, 1) probabilities.

    block_rows: batch rows per grid step.  8K-16K is the safe ceiling on v7x
      (64 MiB VMEM); v5e/v6e (128 MiB VMEM) can sweep 16K-32K.
    bf16_elementwise: run bias-add/ReLU in bf16 (use on v6e/v7x; keep False on v5e).
    """
    B = x.shape[0]
    tb = _pick_tile(B, block_rows)
    grid = (pl.cdiv(B, tb),)

    ew = jnp.bfloat16 if bf16_elementwise else jnp.float32
    ws = [params[f"w{i}"].astype(jnp.bfloat16) for i in range(1, 5)]   # (out, in)
    bs = [params[f"b{i}"].astype(ew) for i in range(1, 5)]             # (out, 1)
    w5 = params["w5"].astype(jnp.float32)                              # (HL4, 1)
    b5 = params["b5"].astype(jnp.float32)                              # (1, 1)

    args = [x]
    in_specs = [pl.BlockSpec((tb, FEATURES), lambda i: (i, 0))]
    for w, b in zip(ws, bs):
        args += [w, b]
        # Full-array blocks with constant index_map => weights stay resident in
        # VMEM across all grid steps (fetched once).
        in_specs.append(pl.BlockSpec(w.shape, lambda i: (0, 0)))
        in_specs.append(pl.BlockSpec(b.shape, lambda i: (0, 0)))
    args += [w5, b5]
    in_specs.append(pl.BlockSpec(w5.shape, lambda i: (0, 0)))
    in_specs.append(pl.BlockSpec(b5.shape, lambda i: (0, 0)))

    out = pl.pallas_call(
        _make_kernel(bf16_elementwise),
        out_shape=jax.ShapeDtypeStruct((1, B), out_dtype),
        grid=grid,
        in_specs=in_specs,
        out_specs=pl.BlockSpec((1, tb), lambda i: (0, i)),
        compiler_params=pltpu.CompilerParams(
            dimension_semantics=("parallel",),
            vmem_limit_bytes=64 * 1024 * 1024),
    )(*args)

    return out[0].reshape(B, 1)


def init_params(key):
    """Deterministic parameter init mimicking the PyTorch module's shapes.

    Linear weights for layers 1-4 are stored in PyTorch layout (out, in) so the
    kernel computes W @ X (feature-major).  The final fc5 weight is stored as a
    (HL4, 1) column (fc5.weight transposed) for the VPU reduce.  Eval-mode
    BatchNorm1d is folded into the preceding Linear:
        scale = gamma / sqrt(running_var + eps)
        W_eff = W * scale[:, None];  b_eff = (b - running_mean) * scale + beta
    Biases are (out, 1) to broadcast along the lane (batch) axis.
    """
    dims = [FEATURES, HL1, HL2, HL3, HL4, 1]
    keys = jax.random.split(key, 32)
    ki = iter(range(32))
    params = {}
    for layer in range(5):
        fan_in, fan_out = dims[layer], dims[layer + 1]
        bound = 1.0 / jnp.sqrt(fan_in)
        w = jax.random.uniform(keys[next(ki)], (fan_out, fan_in),
                               minval=-bound, maxval=bound, dtype=jnp.float32)
        b = jax.random.uniform(keys[next(ki)], (fan_out,),
                               minval=-bound, maxval=bound, dtype=jnp.float32)
        if layer < 4:  # layers followed by BatchNorm1d
            gamma = 1.0 + 0.1 * jax.random.normal(keys[next(ki)], (fan_out,), jnp.float32)
            beta = 0.1 * jax.random.normal(keys[next(ki)], (fan_out,), jnp.float32)
            running_mean = 0.05 * jax.random.normal(keys[next(ki)], (fan_out,), jnp.float32)
            running_var = jnp.abs(
                1.0 + 0.1 * jax.random.normal(keys[next(ki)], (fan_out,), jnp.float32))
            scale = gamma / jnp.sqrt(running_var + BN_EPS)
            w = w * scale[:, None]
            b = (b - running_mean) * scale + beta
            params[f"w{layer+1}"] = w
            params[f"b{layer+1}"] = b.reshape(fan_out, 1)
        else:
            params["w5"] = w.reshape(fan_in, 1)   # fc5.weight^T, (HL4, 1)
            params["b5"] = b.reshape(1, 1)
    return params


def _reference_forward_matched(x, params, bf16_elementwise=False):
    """Mirrors the kernel numerics (bf16 matmul operands, f32 accumulation,
    f32/bf16 elementwise) minus the approx-reciprocal sigmoid."""
    ew = jnp.bfloat16 if bf16_elementwise else jnp.float32
    xb = x.astype(jnp.bfloat16)
    a = lax.dot_general(params["w1"].astype(jnp.bfloat16), xb,
                        dimension_numbers=(((1,), (1,)), ((), ())),
                        preferred_element_type=jnp.float32)
    h = jnp.maximum(a.astype(ew) + params["b1"].astype(ew), 0).astype(jnp.bfloat16)
    for l in (2, 3, 4):
        a = jnp.dot(params[f"w{l}"].astype(jnp.bfloat16), h,
                    preferred_element_type=jnp.float32)
        h = jnp.maximum(a.astype(ew) + params[f"b{l}"].astype(ew), 0).astype(jnp.bfloat16)
    z = jnp.sum(params["w5"] * h.astype(jnp.float32), axis=0, keepdims=True) + params["b5"]
    return jax.nn.sigmoid(z)[0].reshape(-1, 1)


def _reference_forward_f32(x, params):
    h = x.T
    for l in (1, 2, 3, 4):
        h = jnp.maximum(params[f"w{l}"] @ h + params[f"b{l}"], 0.0)
    z = params["w5"].T @ h + params["b5"]
    return jax.nn.sigmoid(z).T


if __name__ == "__main__":
    key = jax.random.PRNGKey(0)
    kx, kp = jax.random.split(key)
    B = 300   # small batch: tile picker gives tb=256 -> 2 grid steps + masked tail
    x = jax.random.normal(kx, (B, FEATURES), dtype=jnp.float32)
    params = init_params(kp)

    fwd = jax.jit(simplenet_forward,
                  static_argnames=("block_rows", "bf16_elementwise", "out_dtype"))

    ref_f32 = _reference_forward_f32(x, params)

    # Exercise both elementwise paths: f32 (v5e-safe default) and bf16 (v6e/v7x).
    for bf16_ew in (False, True):
        out = jax.block_until_ready(fwd(x, params, bf16_elementwise=bf16_ew))
        assert out.shape == (B, 1)
        out_f32 = out.astype(jnp.float32)
        assert bool(jnp.all(jnp.isfinite(out_f32)))
        ref = _reference_forward_matched(x, params, bf16_elementwise=bf16_ew)
        # Matched-precision reference (allow for bf16 output rounding + approx recip).
        assert jnp.allclose(out_f32, ref, atol=5e-3), \
            float(jnp.max(jnp.abs(out_f32 - ref)))
        # Loose sanity check against full-f32 math.
        assert jnp.allclose(out_f32, ref_f32, atol=5e-2)

    print("KERNEL_OK")
</pallas_src>

<mosaic_0001>
module attributes {stable_mosaic.version = 11 : i64} {
  func.func @kernel(%arg0: i32, %arg1: memref<256x42xf32, #tpu.memory_space<vmem>>, %arg2: memref<64x42xbf16, #tpu.memory_space<vmem>>, %arg3: memref<64x1xf32, #tpu.memory_space<vmem>>, %arg4: memref<32x64xbf16, #tpu.memory_space<vmem>>, %arg5: memref<32x1xf32, #tpu.memory_space<vmem>>, %arg6: memref<16x32xbf16, #tpu.memory_space<vmem>>, %arg7: memref<16x1xf32, #tpu.memory_space<vmem>>, %arg8: memref<8x16xbf16, #tpu.memory_space<vmem>>, %arg9: memref<8x1xf32, #tpu.memory_space<vmem>>, %arg10: memref<8x1xf32, #tpu.memory_space<vmem>>, %arg11: memref<1x1xf32, #tpu.memory_space<vmem>>, %arg12: memref<1x256xbf16, #tpu.memory_space<vmem>>) attributes {dimension_semantics = [#tpu.dimension_semantics<parallel>], iteration_bounds = array<i64: 2>, scalar_prefetch = 0 : i64, scratch_operands = 0 : i64, tpu.core_type = #tpu.core_type<tc>, window_params = [{transform_indices = @transform_0, window_bounds = array<i64: 256, 42>}, {pipeline_mode = #tpu.pipeline_mode<synchronous>, transform_indices = @transform_1, window_bounds = array<i64: 64, 42>}, {pipeline_mode = #tpu.pipeline_mode<synchronous>, transform_indices = @transform_2, window_bounds = array<i64: 64, 1>}, {pipeline_mode = #tpu.pipeline_mode<synchronous>, transform_indices = @transform_3, window_bounds = array<i64: 32, 64>}, {pipeline_mode = #tpu.pipeline_mode<synchronous>, transform_indices = @transform_4, window_bounds = array<i64: 32, 1>}, {pipeline_mode = #tpu.pipeline_mode<synchronous>, transform_indices = @transform_5, window_bounds = array<i64: 16, 32>}, {pipeline_mode = #tpu.pipeline_mode<synchronous>, transform_indices = @transform_6, window_bounds = array<i64: 16, 1>}, {pipeline_mode = #tpu.pipeline_mode<synchronous>, transform_indices = @transform_7, window_bounds = array<i64: 8, 16>}, {pipeline_mode = #tpu.pipeline_mode<synchronous>, transform_indices = @transform_8, window_bounds = array<i64: 8, 1>}, {pipeline_mode = #tpu.pipeline_mode<synchronous>, transform_indices = @transform_9, window_bounds = array<i64: 8, 1>}, {pipeline_mode = #tpu.pipeline_mode<synchronous>, transform_indices = @transform_10, window_bounds = array<i64: 1, 1>}, {transform_indices = @transform_11, window_bounds = array<i64: 1, 256>}]} {
    %c0 = arith.constant 0 : index
    %c0_0 = arith.constant 0 : index
    %0 = vector.load %arg1[%c0, %c0_0] : memref<256x42xf32, #tpu.memory_space<vmem>>, vector<256x42xf32>
    %1 = arith.truncf %0 : vector<256x42xf32> to vector<256x42xbf16>
    %c0_1 = arith.constant 0 : index
    %c0_2 = arith.constant 0 : index
    %2 = vector.load %arg2[%c0_1, %c0_2] : memref<64x42xbf16, #tpu.memory_space<vmem>>, vector<64x42xbf16>
    %cst = arith.constant dense<0.000000e+00> : vector<64x256xf32>
    %3 = tpu.matmul %2, %1, %cst {dimension_numbers = #tpu.dot_dimension_numbers<[1], [1], [0], [0], [0, 0, 1, 0], [], []>} : vector<64x42xbf16>, vector<256x42xbf16>, vector<64x256xf32> -> vector<64x256xf32>
    %c0_3 = arith.constant 0 : index
    %c0_4 = arith.constant 0 : index
    %4 = vector.load %arg3[%c0_3, %c0_4] : memref<64x1xf32, #tpu.memory_space<vmem>>, vector<64x1xf32>
    %5 = vector.broadcast %4 : vector<64x1xf32> to vector<64x256xf32>
    %6 = arith.addf %3, %5 : vector<64x256xf32>
    %cst_5 = arith.constant 0.000000e+00 : f32
    %7 = vector.broadcast %cst_5 : f32 to vector<64x256xf32>
    %8 = arith.maximumf %6, %7 : vector<64x256xf32>
    %9 = arith.truncf %8 : vector<64x256xf32> to vector<64x256xbf16>
    %c0_6 = arith.constant 0 : index
    %c0_7 = arith.constant 0 : index
    %10 = vector.load %arg4[%c0_6, %c0_7] : memref<32x64xbf16, #tpu.memory_space<vmem>>, vector<32x64xbf16>
    %cst_8 = arith.constant dense<0.000000e+00> : vector<32x256xf32>
    %11 = tpu.matmul %10, %9, %cst_8 {dimension_numbers = #tpu.dot_dimension_numbers<[1], [0], [0], [1], [0, 0, 1, 1], [], []>} : vector<32x64xbf16>, vector<64x256xbf16>, vector<32x256xf32> -> vector<32x256xf32>
    %c0_9 = arith.constant 0 : index
    %c0_10 = arith.constant 0 : index
    %12 = vector.load %arg5[%c0_9, %c0_10] : memref<32x1xf32, #tpu.memory_space<vmem>>, vector<32x1xf32>
    %13 = vector.broadcast %12 : vector<32x1xf32> to vector<32x256xf32>
    %14 = arith.addf %11, %13 : vector<32x256xf32>
    %cst_11 = arith.constant 0.000000e+00 : f32
    %15 = vector.broadcast %cst_11 : f32 to vector<32x256xf32>
    %16 = arith.maximumf %14, %15 : vector<32x256xf32>
    %17 = arith.truncf %16 : vector<32x256xf32> to vector<32x256xbf16>
    %c0_12 = arith.constant 0 : index
    %c0_13 = arith.constant 0 : index
    %18 = vector.load %arg6[%c0_12, %c0_13] : memref<16x32xbf16, #tpu.memory_space<vmem>>, vector<16x32xbf16>
    %cst_14 = arith.constant dense<0.000000e+00> : vector<16x256xf32>
    %19 = tpu.matmul %18, %17, %cst_14 {dimension_numbers = #tpu.dot_dimension_numbers<[1], [0], [0], [1], [0, 0, 1, 1], [], []>} : vector<16x32xbf16>, vector<32x256xbf16>, vector<16x256xf32> -> vector<16x256xf32>
    %c0_15 = arith.constant 0 : index
    %c0_16 = arith.constant 0 : index
    %20 = vector.load %arg7[%c0_15, %c0_16] : memref<16x1xf32, #tpu.memory_space<vmem>>, vector<16x1xf32>
    %21 = vector.broadcast %20 : vector<16x1xf32> to vector<16x256xf32>
    %22 = arith.addf %19, %21 : vector<16x256xf32>
    %cst_17 = arith.constant 0.000000e+00 : f32
    %23 = vector.broadcast %cst_17 : f32 to vector<16x256xf32>
    %24 = arith.maximumf %22, %23 : vector<16x256xf32>
    %25 = arith.truncf %24 : vector<16x256xf32> to vector<16x256xbf16>
    %c0_18 = arith.constant 0 : index
    %c0_19 = arith.constant 0 : index
    %26 = vector.load %arg8[%c0_18, %c0_19] : memref<8x16xbf16, #tpu.memory_space<vmem>>, vector<8x16xbf16>
    %cst_20 = arith.constant dense<0.000000e+00> : vector<8x256xf32>
    %27 = tpu.matmul %26, %25, %cst_20 {dimension_numbers = #tpu.dot_dimension_numbers<[1], [0], [0], [1], [0, 0, 1, 1], [], []>} : vector<8x16xbf16>, vector<16x256xbf16>, vector<8x256xf32> -> vector<8x256xf32>
    %c0_21 = arith.constant 0 : index
    %c0_22 = arith.constant 0 : index
    %28 = vector.load %arg9[%c0_21, %c0_22] : memref<8x1xf32, #tpu.memory_space<vmem>>, vector<8x1xf32>
    %29 = vector.broadcast %28 : vector<8x1xf32> to vector<8x256xf32>
    %30 = arith.addf %27, %29 : vector<8x256xf32>
    %cst_23 = arith.constant 0.000000e+00 : f32
    %31 = vector.broadcast %cst_23 : f32 to vector<8x256xf32>
    %32 = arith.maximumf %30, %31 : vector<8x256xf32>
    %33 = arith.truncf %32 : vector<8x256xf32> to vector<8x256xbf16>
    %c0_24 = arith.constant 0 : index
    %c0_25 = arith.constant 0 : index
    %34 = vector.load %arg10[%c0_24, %c0_25] : memref<8x1xf32, #tpu.memory_space<vmem>>, vector<8x1xf32>
    %35 = arith.extf %33 : vector<8x256xbf16> to vector<8x256xf32>
    %36 = vector.broadcast %34 : vector<8x1xf32> to vector<8x256xf32>
    %37 = arith.mulf %36, %35 : vector<8x256xf32>
    %cst_26 = arith.constant dense<0.000000e+00> : vector<256xf32>
    %38 = vector.multi_reduction <add>, %37, %cst_26 [0] : vector<8x256xf32> to vector<256xf32>
    %39 = vector.shape_cast %38 : vector<256xf32> to vector<1x256xf32>
    %c0_27 = arith.constant 0 : index
    %c0_28 = arith.constant 0 : index
    %40 = vector.load %arg11[%c0_27, %c0_28] : memref<1x1xf32, #tpu.memory_space<vmem>>, vector<1x1xf32>
    %41 = vector.broadcast %40 : vector<1x1xf32> to vector<1x256xf32>
    %42 = arith.addf %39, %41 : vector<1x256xf32>
    %cst_29 = arith.constant 0.000000e+00 : f32
    %43 = vector.broadcast %cst_29 : f32 to vector<1x256xf32>
    %44 = arith.subf %43, %42 : vector<1x256xf32>
    %45 = math.exp %44 : vector<1x256xf32>
    %cst_30 = arith.constant 1.000000e+00 : f32
    %46 = vector.broadcast %cst_30 : f32 to vector<1x256xf32>
    %47 = arith.addf %46, %45 : vector<1x256xf32>
    %48 = tpu.reciprocal %47 {approx = true} : vector<1x256xf32> -> vector<1x256xf32>
    %49 = arith.truncf %48 : vector<1x256xf32> to vector<1x256xbf16>
    %c0_31 = arith.constant 0 : index
    %c0_32 = arith.constant 0 : index
    %50 = vector.load %arg12[%c0_31, %c0_32] : memref<1x256xbf16, #tpu.memory_space<vmem>>, vector<1x256xbf16>
    tpu.vector_store %arg12[%c0_31, %c0_32], %49 {strides = array<i32>} : memref<1x256xbf16, #tpu.memory_space<vmem>>, vector<1x256xbf16>,
    return
  }
  func.func @transform_0(%arg0: i32) -> (i32, i32) {
    %c0_i32 = arith.constant 0 : i32
    %c0_i32_0 = arith.constant 0 : i32
    return %arg0, %c0_i32 : i32, i32
  }
  func.func @transform_1(%arg0: i32) -> (i32, i32) {
    %c0_i32 = arith.constant 0 : i32
    %c0_i32_0 = arith.constant 0 : i32
    %c0_i32_1 = arith.constant 0 : i32
    return %c0_i32, %c0_i32_0 : i32, i32
  }
  func.func @transform_2(%arg0: i32) -> (i32, i32) {
    %c0_i32 = arith.constant 0 : i32
    %c0_i32_0 = arith.constant 0 : i32
    %c0_i32_1 = arith.constant 0 : i32
    return %c0_i32, %c0_i32_0 : i32, i32
  }
  func.func @transform_3(%arg0: i32) -> (i32, i32) {
    %c0_i32 = arith.constant 0 : i32
    %c0_i32_0 = arith.constant 0 : i32
    %c0_i32_1 = arith.constant 0 : i32
    return %c0_i32, %c0_i32_0 : i32, i32
  }
  func.func @transform_4(%arg0: i32) -> (i32, i32) {
    %c0_i32 = arith.constant 0 : i32
    %c0_i32_0 = arith.constant 0 : i32
    %c0_i32_1 = arith.constant 0 : i32
    return %c0_i32, %c0_i32_0 : i32, i32
  }
  func.func @transform_5(%arg0: i32) -> (i32, i32) {
    %c0_i32 = arith.constant 0 : i32
    %c0_i32_0 = arith.constant 0 : i32
    %c0_i32_1 = arith.constant 0 : i32
    return %c0_i32, %c0_i32_0 : i32, i32
  }
  func.func @transform_6(%arg0: i32) -> (i32, i32) {
    %c0_i32 = arith.constant 0 : i32
    %c0_i32_0 = arith.constant 0 : i32
    %c0_i32_1 = arith.constant 0 : i32
    return %c0_i32, %c0_i32_0 : i32, i32
  }
  func.func @transform_7(%arg0: i32) -> (i32, i32) {
    %c0_i32 = arith.constant 0 : i32
    %c0_i32_0 = arith.constant 0 : i32
    %c0_i32_1 = arith.constant 0 : i32
    return %c0_i32, %c0_i32_0 : i32, i32
  }
  func.func @transform_8(%arg0: i32) -> (i32, i32) {
    %c0_i32 = arith.constant 0 : i32
    %c0_i32_0 = arith.constant 0 : i32
    %c0_i32_1 = arith.constant 0 : i32
    return %c0_i32, %c0_i32_0 : i32, i32
  }
  func.func @transform_9(%arg0: i32) -> (i32, i32) {
    %c0_i32 = arith.constant 0 : i32
    %c0_i32_0 = arith.constant 0 : i32
    %c0_i32_1 = arith.constant 0 : i32
    return %c0_i32, %c0_i32_0 : i32, i32
  }
  func.func @transform_10(%arg0: i32) -> (i32, i32) {
    %c0_i32 = arith.constant 0 : i32
    %c0_i32_0 = arith.constant 0 : i32
    %c0_i32_1 = arith.constant 0 : i32
    return %c0_i32, %c0_i32_0 : i32, i32
  }
  func.func @transform_11(%arg0: i32) -> (i32, i32) {
    %c0_i32 = arith.constant 0 : i32
    %c0_i32_0 = arith.constant 0 : i32
    return %c0_i32, %arg0 : i32, i32
  }
}

</mosaic_0001>

<bundles_post_ra>
// kernel: simplenet_forward.1
= control target key start
LH: loop header
LB: loop body
LE: loop exit
PB: predicated region body
PF: predicated region fallthrough
CT: control target
= control target key end

     0   :  { %s1584_s0 = inlined_call_operand.vmem [shape: f32[300,42], index: 0, kind: input, shape index: {}]   ;;  %s1585_s1 = inlined_call_operand.vmem [shape: bf16[64,42], index: 1, kind: input, shape index: {}]   ;;  %s1586_s2 = inlined_call_operand.vmem [shape: f32[64,1], index: 2, kind: input, shape index: {}]   ;;  %s1587_s3 = inlined_call_operand.vmem [shape: bf16[32,64], index: 3, kind: input, shape index: {}]   ;;  %s1588_s4 = inlined_call_operand.vmem [shape: f32[32,1], index: 4, kind: input, shape index: {}]   ;;  %s1589_s5 = inlined_call_operand.vmem [shape: bf16[16,32], index: 5, kind: input, shape index: {}]   ;;  %s1590_s6 = inlined_call_operand.vmem [shape: f32[16,1], index: 6, kind: input, shape index: {}]   ;;  %s1591_s7 = inlined_call_operand.vmem [shape: bf16[8,16], index: 7, kind: input, shape index: {}]   ;;  %s1592_s8 = inlined_call_operand.vmem [shape: f32[8,1], index: 8, kind: input, shape index: {}]   ;;  %s1593_s9 = inlined_call_operand.vmem [shape: f32[8,1], index: 9, kind: input, shape index: {}]   ;;  %s1594_s10 = inlined_call_operand.<no memory space> [shape: f32[1,1], index: 10, kind: input, shape index: {}]   ;;  %s1595_s11 = inlined_call_operand.hbm [shape: bf16[1,300], index: 11, kind: output, shape index: {}]  }
   0x1   :  { %v16_v0 = vstv %s1594_s10 }
   0x2   :  { %17 = vst [vmem:[#allocation2] sm:$0x1] %v16_v0 }
   0x3   :  { %18 = vsyncpa [#allocation4], 0 }
   0x4   :  { %20 = vsyncpa [#allocation4 + $0x1], 0  ;;  %s1336_s19 = smov 0   ;;  %s1338_s20 = smov 0  }
   0x5   :  { %s1340_s21 = smov 0   ;;  %s1342_s22 = smov 0  }
   0x6 LB: > { %s1357_s10 = sadd.s32 4294967295, %s1268_s22   ;;  %s1088_s23 = sadd.s32 4294967294, %s1268_s22   ;;  %s1268_s22 = sphi %s1342_s22, %s1603_s22   ;;  %s1264_s21 = sphi %s1340_s21, %s1602_s21   ;;  %s1260_s20 = sphi %s1338_s20, %s1601_s20   ;;  %s1256_s19 = sphi %s1336_s19, %s1600_s19  }
   0x7   : > { %s1361_s24 = sadd.s32 1, %s1268_s22   ;;  %s269_s25 = sadd.s32 1, %s1264_s21 }
   0x8   : > { %s266_s26 = ssub.s32 %s1268_s22, %s1361_s24  ;;  %p279_p0 = scmp.ne.s32.totalorder %s1264_s21, %s1260_s20 }
   0x9   : > { %p267_p1 = scmp.eq.s32.totalorder %s266_s26, 0  ;;  %p280_p2 = scmp.eq.s32.totalorder %s1357_s10, 1 }
   0xa   : > { %p285_p3 = scmp.ne.s32.totalorder %s1260_s20, %s1256_s19  ;;  %p286_p4 = scmp.eq.s32.totalorder %s1088_s23, 1 }
   0xb   : > { %s1372_s27 = scalar_select %p267_p1, %s1264_s21, %s269_s25  }
   0xc   : > { %p1374_p5 = por %p280_p2, %p279_p0  ;;  %p1378_p6 = por %p286_p4, %p285_p3 }
   0xd   : > { %1596 = sst [smem:[#allocation6_spill]] %s1372_s27  ;;  %p1091_p7 = scmp.ge.s32.totalorder %s1268_s22, 1 }
   0xe   : > { %p351_p8 = scmp.lt.s32.totalorder %s1268_s22, 3 }
  0x10   : > { %p352_p9 = pnand %p1091_p7, %p351_p8 }
  0x11   : > { %s1385_s30 = sshll.u32 (!%p352_p9), %s1357_s10, 5  ;;  %s392_s13 = sand.u32 (!%p352_p9), 1, %s1260_s20  }
  0x12   : > { %355 = sbr.rel (%p352_p9) target bundleno = 1057 (0x421), region = 64  ;;  %p400_p10 = scmp.lt.s32.totalorder (!%p352_p9), %s1385_s30, 37 }
  0x13   : > { %s1537_s15 = scalar_lea.sflag (!%p352_p9), [#allocation4], %s392_s13 }
  0x17   : > { %v1391_v1 = vld [vmem:[%s1585_s1] sm:$0xff]   ;;  %vm539_vm0 = vcmask 343040   ;;  %s401_s14 = scalar_select %p400_p10, %s1385_s30, 37  ;;  %v1270_v2 = vmov 0   ;;  %v477_v3 = vld [vmem:[%s1586_s2 + $0x30] sm:$0xff]  ;;  %v478_v5 = vld [vmem:[%s1586_s2 + $0x38] sm:$0xff] }
  0x18   : > { %1135 = vmatprep.mubr.msk.bf16.mxu0 %vm539_vm0, %v1391_v1  ;;  %1191 = vset.pattern.permute.xlu0 %v1270_v2  ;;  %v475_v4 = vld [vmem:[%s1586_s2 + $0x20] sm:$0xff]  ;;  %v476_v6 = vld [vmem:[%s1586_s2 + $0x28] sm:$0xff]  ;;  %v473_v18 = vld [vmem:[%s1586_s2 + $0x10] sm:$0xff]  ;;  %vm735_vm1 = vcmask 523264   ;;  %vm826_vm2 = vcmask 261120   ;;  %vm886_vm3 = vcmask 130048  }
  0x19   : > { %1192 = vset.pattern.permute.xlu1 %v1270_v2  ;;  %774 = vmatprep.mubr.bf16.mxu1 %v1270_v2  ;;  %s1094_s17 = sshll.u32 %s401_s14, 3  ;;  %v474_v20 = vld [vmem:[%s1586_s2 + $0x18] sm:$0xff]  ;;  %v471_v24 = vld [vmem:[%s1586_s2] sm:$0xff]  ;;  %v472_v25 = vld [vmem:[%s1586_s2 + $0x8] sm:$0xff]  ;;  %vm999_vm4 = vcmask 1040384   ;;  %vm1002_vm6 = vcmask 1041409  }
  0x1a   : > { %511 = vperm.xlu0 %1191, %v477_v3   ;;  %s1408_s12 = scalar_lea.vmem %s1584_s0, %s1094_s17  ;;  %501 = vperm.xlu1 %1192, %v475_v4   ;;  %v703_v30 = vld [vmem:[%s1588_s4 + $0x10] sm:$0xff]  ;;  %v704_v31 = vld [vmem:[%s1588_s4 + $0x18] sm:$0xff]  ;;  %v701_v35 = vld [vmem:[%s1588_s4] sm:$0xff]  ;;  %vm1000_vm5 = vsmask.f32 256  ;;  %s1112_s27 = sshll.u32 (%p1374_p5), %s1357_s10, 1 }
  0x1b   : > { %v445_v7 = vld [vmem:[%s1408_s12 + $0xf0] sm:$0xff]  ;;  %v446_v8 = vld [vmem:[%s1408_s12 + $0xf8] sm:$0xff]  ;;  %v443_v12 = vld [vmem:[%s1408_s12 + $0xe0] sm:$0xff]  ;;  %vm1003_vm7 = vsmask.f32 1280  ;;  %s1018_s16 = ssub.s32 (%p1374_p5), 3, %s1112_s27 }
  0x1c   : > { %v429_v9 = vld [vmem:[%s1408_s12 + $0x70] sm:$0xff]  ;;  %v462_v10 = vpack.c.bf16 %v446_v8, %v445_v7  ;;  %v430_v11 = vld [vmem:[%s1408_s12 + $0x78] sm:$0xff]  ;;  %v444_v13 = vld [vmem:[%s1408_s12 + $0xe8] sm:$0xff]  ;;  %p1019_p11 = scmp.lt.s32.totalorder (%p1374_p5), %s1018_s16, 2 }
  0x1d   : > { %v454_v14 = vpack.c.bf16 %v430_v11, %v429_v9  ;;  %v461_v15 = vpack.c.bf16 %v444_v13, %v443_v12  ;;  %v427_v16 = vld [vmem:[%s1408_s12 + $0x60] sm:$0xff]  ;;  %v428_v17 = vld [vmem:[%s1408_s12 + $0x68] sm:$0xff]  ;;  %v441_v22 = vld [vmem:[%s1408_s12 + $0xd0] sm:$0xff] }
  0x1e   : > { %516 = vperm.xlu0 %1191, %v478_v5   ;;  %1143 = vmatprep.subr.msk.bf16.mxu0 %vm539_vm0, %v462_v10  ;;  %v453_v21 = vpack.c.bf16 %v428_v17, %v427_v16  ;;  %v442_v23 = vld [vmem:[%s1408_s12 + $0xd8] sm:$0xff]  ;;  %v425_v28 = vld [vmem:[%s1408_s12 + $0x50] sm:$0xff]  ;;  %v439_v32 = vld [vmem:[%s1408_s12 + $0xc0] sm:$0xff] }
  0x1f   : > { %506 = vperm.xlu1 %1192, %v476_v6   ;;  %v574_v19 = vsel %vm539_vm0, %v454_v14, 0  ;;  %v460_v27 = vpack.c.bf16 %v442_v23, %v441_v22  ;;  %v426_v29 = vld [vmem:[%s1408_s12 + $0x58] sm:$0xff]  ;;  %v440_v33 = vld [vmem:[%s1408_s12 + $0xc8] sm:$0xff]  ;;  %v423_v39 = vld [vmem:[%s1408_s12 + $0x40] sm:$0xff] }
  0x20   : > { %1120 = vmatpush3.bf16.xpose.msra.mxu0 %v574_v19  ;;  %v571_v26 = vsel %vm539_vm0, %v453_v21, 0  ;;  %v452_v34 = vpack.c.bf16 %v426_v29, %v425_v28  ;;  %v702_v36 = vld [vmem:[%s1588_s4 + $0x8] sm:$0xff]  ;;  %v459_v38 = vpack.c.bf16 %v440_v33, %v439_v32  ;;  %v809_v41 = vld [vmem:[%s1590_s6] sm:$0xff]  ;;  %v437_v44 = vld [vmem:[%s1408_s12 + $0xb0] sm:$0xff] }
  0x21   : > { %1144 = vmatprep.subr.msk.bf16.mxu0 %vm539_vm0, %v461_v15  ;;  %v424_v40 = vld [vmem:[%s1408_s12 + $0x48] sm:$0xff]  ;;  %v438_v45 = vld [vmem:[%s1408_s12 + $0xb8] sm:$0xff]  ;;  %v880_v46 = vld [vmem:[%s1592_s8] sm:$0xff] }
  0x22   : > { %491 = vperm.xlu0 %1191, %v473_v18   ;;  %v568_v37 = vsel %vm539_vm0, %v452_v34, 0  ;;  %v810_v42 = vld [vmem:[%s1590_s6 + $0x8] sm:$0xff]  ;;  %v451_v43 = vpack.c.bf16 %v424_v40, %v423_v39  ;;  %v935_v47 = vld [vmem:[%s1593_s9] sm:$0xff]  ;;  %v458_v49 = vpack.c.bf16 %v438_v45, %v437_v44  ;;  %v421_v50 = vld [vmem:[%s1408_s12 + $0x30] sm:$0xff] }
  0x23   : > { %496 = vperm.xlu1 %1192, %v474_v20   ;;  %v422_v51 = vld [vmem:[%s1408_s12 + $0x38] sm:$0xff]  ;;  %v957_v52 = vld [vmem:[#allocation2] sm:$0x1]  ;;  %v436_v55 = vld [vmem:[%s1408_s12 + $0xa8] sm:$0xff] }
  0x24   : > { %v565_v48 = vsel %vm539_vm0, %v451_v43, 0  ;;  %v450_v53 = vpack.c.bf16 %v422_v51, %v421_v50  ;;  %v435_v54 = vld [vmem:[%s1408_s12 + $0xa0] sm:$0xff]  ;;  %v420_v59 = vld [vmem:[%s1408_s12 + $0x28] sm:$0xff]  ;;  %v433_v61 = vld [vmem:[%s1408_s12 + $0x90] sm:$0xff] }
  0x25   : > { %v457_v57 = vpack.c.bf16 %v436_v55, %v435_v54  ;;  %v419_v58 = vld [vmem:[%s1408_s12 + $0x20] sm:$0xff]  ;;  %v434_v62 = vld [vmem:[%s1408_s12 + $0x98] sm:$0xff]  ;;  %v417_v3 = vld [vmem:[%s1408_s12 + $0x10] sm:$0xff] }
  0x26   : > { %481 = vperm.xlu0 %1191, %v471_v24   ;;  %v562_v56 = vsel %vm539_vm0, %v450_v53, 0  ;;  %v449_v60 = vpack.c.bf16 %v420_v59, %v419_v58  ;;  %v456_v0 = vpack.c.bf16 %v434_v62, %v433_v61  ;;  %v418_v4 = vld [vmem:[%s1408_s12 + $0x18] sm:$0xff]  ;;  %v431_v6 = vld [vmem:[%s1408_s12 + $0x80] sm:$0xff]  ;;  %v432_v7 = vld [vmem:[%s1408_s12 + $0x88] sm:$0xff] }
  0x27   : > { %486 = vperm.xlu1 %1192, %v472_v25   ;;  %v448_v5 = vpack.c.bf16 %v418_v4, %v417_v3  ;;  %v455_v9 = vpack.c.bf16 %v432_v7, %v431_v6  ;;  %v415_v10 = vld [vmem:[%s1408_s12] sm:$0xff]  ;;  %v416_v11 = vld [vmem:[%s1408_s12 + $0x8] sm:$0xff]  ;;  %v1195_v15 = vld [vmem:[%s1585_s1 + $0x10] sm:$0xff]   ;;  %s1092_s12 = sshll.u32 %s392_s13, 1 }
  0x28   : > { %1122 = vmatpush3.bf16.xpose.msra.mxu0 %v571_v26  ;;  %v559_v63 = vsel %vm539_vm0, %v449_v60, 0  ;;  %v447_v12 = vpack.c.bf16 %v416_v11, %v415_v10  ;;  %v1194_v14 = vld [vmem:[%s1585_s1 + $0x8] sm:$0xff]   ;;  %v1196_v16 = vld [vmem:[%s1585_s1 + $0x18] sm:$0xff]   ;;  %vm1001_vm8 = vmand %vm999_vm4, %vm1000_vm5  ;;  %s394_s14 = scalar_lea.vmem [#allocation3], %s1092_s12 }
  0x29   : > { %1145 = vmatprep.subr.msk.bf16.mxu0 %vm539_vm0, %v460_v27  ;;  %v556_v8 = vsel %vm539_vm0, %v448_v5, 0  ;;  %vm1004_vm9 = vmand %vm1002_vm6, %vm1003_vm7 }
  0x2a   : > { %717 = vperm.xlu0 %1191, %v703_v30   ;;  %v553_v13 = vsel %vm539_vm0, %v447_v12, 0  ;;  %vm1005_vm10 = vmor %vm1004_vm9, %vm1001_vm8 }
  0x2b   : > { %722 = vperm.xlu1 %1192, %v704_v31  }
  0x2e   : > { %707 = vperm.xlu0 %1191, %v701_v35  }
  0x2f   : > { %712 = vperm.xlu1 %1192, %v702_v36  }
  0x30   : > { %1124 = vmatpush3.bf16.xpose.msra.mxu0 %v568_v37 }
  0x31   : > { %1146 = vmatprep.subr.msk.bf16.mxu0 %vm539_vm0, %v459_v38 }
  0x32   : > { %813 = vperm.xlu0 %1191, %v809_v41  }
  0x33   : > { %818 = vperm.xlu1 %1192, %v810_v42  }
  0x36   : > { %883 = vperm.xlu0 %1191, %v880_v46  }
  0x37   : > { %940 = vperm.xlu1 %1192, %v935_v47  }
  0x38   : > { %1126 = vmatpush3.bf16.xpose.msra.mxu0 %v565_v48 }
  0x39   : > { %1147 = vmatprep.subr.msk.bf16.mxu0 %vm539_vm0, %v458_v49 }
  0x3a   : > { %960 = vperm.xlu0 %1191, %v957_v52  }
  0x40   : > { %1128 = vmatpush3.bf16.xpose.msra.mxu0 %v562_v56 }
  0x41   : > { %1148 = vmatprep.subr.msk.bf16.mxu0 %vm539_vm0, %v457_v57 }
  0x48   : > { %1130 = vmatpush3.bf16.xpose.msra.mxu0 %v559_v63 }
  0x49   : > { %1149 = vmatprep.subr.msk.bf16.mxu0 %vm539_vm0, %v456_v0 }
  0x50   : > { %1132 = vmatpush3.bf16.xpose.msra.mxu0 %v556_v8 }
  0x51   : > { %1150 = vmatprep.subr.msk.bf16.mxu0 %vm539_vm0, %v455_v9 }
  0x58   : > { %1134 = vmatpush3.bf16.xpose.msra.mxu0 %v553_v13 }
  0x5f   : > { %1136 = vmatmul.mubr.msk.bf16.vlgmr.msra.gmra.mxu0 %vm539_vm0, %v1391_v1 }
  0x60   : > { %1137 = vmatprep.mubr.msk.bf16.mxu0 %vm539_vm0, %v1194_v14 }
  0x67   : > { %1138 = vmatmul.mubr.msk.bf16.gmra.mxu0 %vm539_vm0, %v1194_v14 }
  0x68   : > { %1139 = vmatprep.mubr.msk.bf16.mxu0 %vm539_vm0, %v1195_v15 }
  0x6f   : > { %1140 = vmatmul.mubr.msk.bf16.gmra.mxu0 %vm539_vm0, %v1195_v15 }
  0x70   : > { %1141 = vmatprep.mubr.msk.bf16.mxu0 %vm539_vm0, %v1196_v16 }
  0x77   : > { %1142 = vmatmul.mubr.msk.bf16.gmra.mxu0 %vm539_vm0, %v1196_v16 }
  0x95   : > { %v502_v25 = vpop.permute.xlu1 %501  ;;  %v512_v27 = vpop.permute.xlu0 %511 }
  0x99   : > { %v517_v32 = vpop.permute.xlu0 %516 }
  0x9a   : > { %v507_v30 = vpop.permute.xlu1 %506 }
  0x9d   : > { %v492_v43 = vpop.permute.xlu0 %491 }
  0x9e   : > { %v497_v38 = vpop.permute.xlu1 %496 }
  0xa1   : > { %v482_v62 = vpop.permute.xlu0 %481 }
  0xa2   : > { %v487_v55 = vpop.permute.xlu1 %486 }
 0x11f   : > { %v634_v1 = vpop.f32.mrf.mxu0 }
 0x120   : > { %v635_v10 = vadd.f32 %v634_v1, %v482_v62  ;;  %v1198_v1 = vld [vmem:[%s1587_s3 + $0x8] sm:$0xff]  }
 0x121   : > { %v636_v17 = vpop.f32.mrf.mxu0 }
 0x122   : > { %v637_v3 = vadd.f32 %v636_v17, %v482_v62  ;;  %v673_v16 = vmax.f32 %v635_v10, 0.0  ;;  %v1197_v17 = vld [vmem:[%s1587_s3] sm:$0xff]  }
 0x123   : > { %v638_v18 = vpop.f32.mrf.mxu0 }
 0x124   : > { %v639_v5 = vadd.f32 %v638_v18, %v487_v55  ;;  %v674_v12 = vmax.f32 %v637_v3, 0.0 }
 0x125   : > { %v640_v19 = vpop.f32.mrf.mxu0 }
 0x126   : > { %v641_v59 = vadd.f32 %v640_v19, %v487_v55  ;;  %v675_v13 = vmax.f32 %v639_v5, 0.0 }
 0x127   : > { %v644_v20 = vpop.f32.mrf.mxu0 }
 0x128   : > { %v645_v63 = vadd.f32 %v644_v20, %v492_v43  ;;  %v676_v8 = vmax.f32 %v641_v59, 0.0  ;;  %v689_v19 = vpack.c.bf16 %v675_v13, %v673_v16 }
 0x129   : > { %v646_v21 = vpop.f32.mrf.mxu0 }
 0x12a   : > { %v647_v52 = vadd.f32 %v646_v21, %v492_v43  ;;  %v677_v11 = vmax.f32 %v645_v63, 0.0  ;;  %v690_v15 = vpack.c.bf16 %v676_v8, %v674_v12 }
 0x12b   : > { %v648_v22 = vpop.f32.mrf.mxu0 }
 0x12c   : > { %v649_v56 = vadd.f32 %v648_v22, %v497_v38  ;;  %v678_v4 = vmax.f32 %v647_v52, 0.0  ;;  %v723_v22 = vpop.permute.xlu1 %722 }
 0x12d   : > { %v650_v23 = vpop.f32.mrf.mxu0 }
 0x12e   : > { %v651_v46 = vadd.f32 %v650_v23, %v497_v38  ;;  %v679_v6 = vmax.f32 %v649_v56, 0.0 }
 0x12f   : > { %v654_v24 = vpop.f32.mrf.mxu0 }
 0x130   : > { %v655_v50 = vadd.f32 %v654_v24, %v502_v25  ;;  %v680_v60 = vmax.f32 %v651_v46, 0.0  ;;  %v691_v14 = vpack.c.bf16 %v679_v6, %v677_v11  ;;  %v718_v24 = vpop.permute.xlu0 %717 }
 0x131   : > { %v656_v26 = vpop.f32.mrf.mxu0 }
 0x132   : > { %v657_v41 = vadd.f32 %v656_v26, %v502_v25  ;;  %v681_v0 = vmax.f32 %v655_v50, 0.0  ;;  %v692_v9 = vpack.c.bf16 %v680_v60, %v678_v4 }
 0x133   : > { %v658_v28 = vpop.f32.mrf.mxu0 }
 0x134   : > { %v659_v44 = vadd.f32 %v658_v28, %v507_v30  ;;  %v682_v53 = vmax.f32 %v657_v41, 0.0 }
 0x135   : > { %v660_v29 = vpop.f32.mrf.mxu0 }
 0x136   : > { %v661_v35 = vadd.f32 %v660_v29, %v507_v30  ;;  %v683_v57 = vmax.f32 %v659_v44, 0.0 }
 0x137   : > { %v664_v31 = vpop.f32.mrf.mxu0 }
 0x138   : > { %v665_v39 = vadd.f32 %v664_v31, %v512_v27  ;;  %v684_v47 = vmax.f32 %v661_v35, 0.0  ;;  %v693_v7 = vpack.c.bf16 %v683_v57, %v681_v0 }
 0x139   : > { %v666_v33 = vpop.f32.mrf.mxu0 }
 0x13a   : > { %v667_v36 = vadd.f32 %v666_v33, %v512_v27  ;;  %v685_v51 = vmax.f32 %v665_v39, 0.0  ;;  %v694_v61 = vpack.c.bf16 %v684_v47, %v682_v53  ;;  %v713_v27 = vpop.permute.xlu1 %712 }
 0x13b   : > { %v668_v34 = vpop.f32.mrf.mxu0 }
 0x13c   : > { %v669_v37 = vadd.f32 %v668_v34, %v517_v32  ;;  %v686_v48 = vmax.f32 %v667_v36, 0.0 }
 0x13d   : > { %v670_v40 = vpop.f32.mrf.mxu0 }
 0x13e   : > { %v671_v42 = vadd.f32 %v670_v40, %v517_v32  ;;  %v687_v45 = vmax.f32 %v669_v37, 0.0  ;;  %v708_v32 = vpop.permute.xlu0 %707  ;;  %v819_v55 = vpop.permute.xlu1 %818 }
 0x140   : > { %v688_v49 = vmax.f32 %v671_v42, 0.0  ;;  %v695_v58 = vpack.c.bf16 %v687_v45, %v685_v51  ;;  %v1199_v51 = vld [vmem:[%s1589_s5] sm:$0xff]  }
 0x142   : > { %v696_v54 = vpack.c.bf16 %v688_v49, %v686_v48 }
 0x144   : > { %750 = vmatprep.subr.bf16.mxu1 %v696_v54  ;;  %v814_v54 = vpop.permute.xlu0 %813 }
 0x145   : > { %751 = vmatpush1.bf16.msra.mxu1 %v695_v58 }
 0x146   : > { %752 = vmatprep.subr.bf16.mxu1 %v694_v61 }
 0x148   : > { %v884_v6 = vpop.permute.xlu0 %883 }
 0x149   : > { %753 = vmatpush1.bf16.msra.mxu1 %v693_v7 }
 0x14a   : > { %754 = vmatprep.subr.bf16.mxu1 %v692_v9 }
 0x14d   : > { %755 = vmatpush1.bf16.msra.mxu1 %v691_v14 }
 0x14e   : > { %756 = vmatprep.subr.bf16.mxu1 %v690_v15 }
 0x151   : > { %757 = vmatpush1.bf16.msra.mxu1 %v689_v19 }
 0x154   : > { %1105 = vmatmul.mubr.msk.bf16.vlgmr.msra.gmra.mxu1 %vm735_vm1, %v1197_v17  ;;  %v941_v17 = vpop.permute.xlu1 %940 }
 0x155   : > { %784 = vmatprep.mubr.bf16.mxu1 %v1270_v2 }
 0x15c   : > { %1106 = vmatmul.mubr.msk.bf16.gmra.mxu1 %vm735_vm1, %v1198_v1  ;;  %v963_v1 = vlaneseq }
 0x15d   : > { %862 = vmatprep.mubr.bf16.mxu1 %v1270_v2 }
 0x214   : > { %v776_v18 = vpop.f32.mrf.mxu1 }
 0x215   : > { %v777_v42 = vadd.f32 %v776_v18, %v708_v32 }
 0x216   : > { %v778_v20 = vpop.f32.mrf.mxu1 }
 0x217   : > { %v779_v35 = vadd.f32 %v778_v20, %v708_v32  ;;  %v795_v49 = vmax.f32 %v777_v42, 0.0 }
 0x218   : > { %v780_v21 = vpop.f32.mrf.mxu1 }
 0x219   : > { %v781_v37 = vadd.f32 %v780_v21, %v713_v27  ;;  %v796_v44 = vmax.f32 %v779_v35, 0.0 }
 0x21a   : > { %v782_v23 = vpop.f32.mrf.mxu1 }
 0x21b   : > { %v783_v29 = vadd.f32 %v782_v23, %v713_v27  ;;  %v797_v46 = vmax.f32 %v781_v37, 0.0  ;;  %v964_v23 = vshrl.u32 %v963_v1, 7 }
 0x21c   : > { %v786_v25 = vpop.f32.mrf.mxu1 }
 0x21d   : > { %v787_v33 = vadd.f32 %v786_v25, %v718_v24  ;;  %v798_v39 = vmax.f32 %v783_v29, 0.0  ;;  %v803_v50 = vpack.c.bf16 %v797_v46, %v795_v49 }
 0x21e   : > { %v788_v26 = vpop.f32.mrf.mxu1 }
 0x21f   : > { %v789_v30 = vadd.f32 %v788_v26, %v718_v24  ;;  %v799_v43 = vmax.f32 %v787_v33, 0.0  ;;  %v804_v48 = vpack.c.bf16 %v798_v39, %v796_v44 }
 0x220   : > { %v790_v28 = vpop.f32.mrf.mxu1 }
 0x221   : > { %v791_v31 = vadd.f32 %v790_v28, %v723_v22  ;;  %v800_v40 = vmax.f32 %v789_v30, 0.0  ;;  %v965_v28 = vsub.s32 0, %v964_v23 }
 0x222   : > { %v792_v34 = vpop.f32.mrf.mxu1 }
 0x223   : > { %v793_v36 = vadd.f32 %v792_v34, %v723_v22  ;;  %v801_v38 = vmax.f32 %v791_v31, 0.0  ;;  %v961_v31 = vpop.permute.xlu0 %960 }
 0x224   : > { %v966_v34 = vrot.slane %v961_v31, %v965_v28 }
 0x225   : > { %v802_v41 = vmax.f32 %v793_v36, 0.0  ;;  %v805_v47 = vpack.c.bf16 %v801_v38, %v799_v43 }
 0x227   : > { %v806_v45 = vpack.c.bf16 %v802_v41, %v800_v40 }
 0x229   : > { %842 = vmatprep.subr.bf16.mxu1 %v806_v45 }
 0x22a   : > { %843 = vmatpush1.bf16.msra.mxu1 %v805_v47 }
 0x22b   : > { %844 = vmatprep.subr.bf16.mxu1 %v804_v48  ;;  %v1271_v48 = vmov 1966171168  }
 0x22c   : > { %v985_v49 = vunpack.c.l.s4 %v1271_v48 }
 0x22e   : > { %845 = vmatpush1.bf16.msra.mxu1 %v803_v50  ;;  %v986_v50 = vunpack.c.0.s8 %v985_v49 }
 0x231   : > { %1108 = vmatmul.mubr.msk.bf16.vlgmr.msra.gmra.mxu1 %vm826_vm2, %v1199_v51 }
 0x232   : > { %922 = vmatprep.mubr.bf16.mxu1 %v1270_v2  ;;  %v879_v2 = vld [vmem:[%s1591_s7] sm:$0xf] }
 0x2f1   : > { %v864_v52 = vpop.f32.mrf.mxu1 }
 0x2f2   : > { %v865_v59 = vadd.f32 %v864_v52, %v814_v54  ;;  %v989_v52 = vsub.s32 %v986_v50, %v964_v23 }
 0x2f3   : > { %v866_v53 = vpop.f32.mrf.mxu1 }
 0x2f4   : > { %v867_v57 = vadd.f32 %v866_v53, %v814_v54  ;;  %v873_v3 = vmax.f32 %v865_v59, 0.0 }
 0x2f5   : > { %v868_v56 = vpop.f32.mrf.mxu1 }
 0x2f6   : > { %v869_v58 = vadd.f32 %v868_v56, %v819_v55  ;;  %v874_v63 = vmax.f32 %v867_v57, 0.0  ;;  %v1006_v56 = vld [vmem:[%s394_s14] sm:$0x3] }
 0x2f7   : > { %v870_v60 = vpop.f32.mrf.mxu1 }
 0x2f8   : > { %v871_v61 = vadd.f32 %v870_v60, %v819_v55  ;;  %v875_v62 = vmax.f32 %v869_v58, 0.0 }
 0x2fa   : > { %v876_v0 = vmax.f32 %v871_v61, 0.0  ;;  %v877_v5 = vpack.c.bf16 %v875_v62, %v873_v3 }
 0x2fc   : > { %v878_v4 = vpack.c.bf16 %v876_v0, %v874_v63 }
 0x2fe   : > { %904 = vmatprep.subr.bf16.mxu1 %v878_v4 }
 0x2ff   : > { %905 = vmatpush1.bf16.msra.mxu1 %v877_v5 }
 0x302   : > { %1109 = vmatmul.mubr.msk.bf16.vlgmr.msra.gmra.mxu1 %vm886_vm3, %v879_v2 }
 0x3c2   : > { %v924_v7 = vpop.f32.mrf.mxu1 }
 0x3c3   : > { %v925_v8 = vadd.f32 %v924_v7, %v884_v6 }
 0x3c4   : > { %v926_v9 = vpop.f32.mrf.mxu1 }
 0x3c5   : > { %v931_v10 = vmax.f32 %v925_v8, 0.0  ;;  %v927_v11 = vadd.f32 %v926_v9, %v884_v6 }
 0x3c6   : > { %v928_v12 = vpop.f32.mrf.mxu1 }
 0x3c7   : > { %v933_v13 = vpack.c.bf16 %v931_v10, %v931_v10  ;;  %v932_v14 = vmax.f32 %v927_v11, 0.0 }
 0x3c8   : > { %v929_v15 = vpop.f32.mrf.mxu1 }
 0x3c9   : > { %v936_v16 = vunpack.c.l.bf16 %v933_v13  ;;  %v934_v19 = vpack.c.bf16 %v932_v14, %v932_v14 }
 0x3cb   : > { %v943_v18 = vmul.f32 %v941_v17, %v936_v16  ;;  %v937_v20 = vunpack.c.l.bf16 %v934_v19 }
 0x3cd   : > { %v945_v21 = vrot.slane %v943_v18, 4  ;;  %v944_v22 = vmul.f32 %v941_v17, %v937_v20 }
 0x3cf   : > { %v946_v24 = vadd.f32 %v945_v21, %v943_v18  ;;  %v951_v25 = vrot.slane %v944_v22, 4 }
 0x3d1   : > { %v947_v26 = vrot.slane %v946_v24, 2  ;;  %v952_v27 = vadd.f32 %v951_v25, %v944_v22 }
 0x3d3   : > { %v948_v29 = vadd.f32 %v947_v26, %v946_v24  ;;  %v953_v30 = vrot.slane %v952_v27, 2 }
 0x3d5   : > { %v949_v32 = vrot.slane %v948_v29, 1  ;;  %v954_v33 = vadd.f32 %v953_v30, %v952_v27 }
 0x3d7   : > { %v950_v35 = vadd.f32 %v949_v32, %v948_v29  ;;  %v955_v36 = vrot.slane %v954_v33, 1 }
 0x3d9   : > { %v967_v37 = vadd.f32 %v966_v34, %v950_v35  ;;  %v956_v38 = vadd.f32 %v955_v36, %v954_v33 }
 0x3db   : > { %v969_v39 = vsub.f32 0.0, %v967_v37  ;;  %v968_v40 = vadd.f32 %v966_v34, %v956_v38 }
 0x3dd   : > { %v971_v41 = vmul.f32 1.442695, %v969_v39  ;;  %v970_v42 = vsub.f32 0.0, %v968_v40 }
 0x3df   : > { %1200 = vpow2.f32 %v971_v41  ;;  %v973_v43 = vmul.f32 1.442695, %v970_v42 }
 0x3e1   : > { %1202 = vpow2.f32 %v973_v43 }
 0x3ec   : > { %v1201_v44 = vpop.eup %1200 }
 0x3ed   : > { %v975_v45 = vadd.f32 1.0, %v1201_v44 }
 0x3ee   : > { %v1203_v46 = vpop.eup %1202 }
 0x3ef   : > { %v976_v47 = vadd.f32 1.0, %v1203_v46  ;;  %1204 = vrcp.f32 %v975_v45 }
 0x3f1   : > { %1206 = vrcp.f32 %v976_v47 }
 0x3fc   : > { %v1205_v51 = vpop.eup %1204 }
 0x3fe   : > { %v1207_v53 = vpop.eup %1206 }
 0x3ff   : > { %v1110_v54 = vpack.c.bf16 %v1207_v53, %v1205_v51 }
 0x401   : > { %v990_v55 = vrot.slane %v1110_v54, %v989_v52 }
 0x402   : > { %1016 = sbr.rel (!%p1374_p5) target bundleno = 1057 (0x421), region = 68 }
 0x403   : > { %v997_v57 = vrot.slane %v990_v55, %v989_v52 }
 0x405   : > { %v1007_v58 = vsel %vm1005_vm10, %v997_v57, %v1006_v56 }
 0x406   : > { %1008 = vst [vmem:[%s394_s14] sm:$0x3] %v1007_v58 }
 0x407   : > { %s1605_s16 = smov (!%p1019_p11, %s1018_s16), 2 }
 0x408   : > { %s1542_s17 = sshll.u32 %s1605_s16, 4 }
 0x409   : > { %s1023_s18 = ssub.s32 32, %s1542_s17 }
 0x40a   : > { %1024 = vsyncadd %s1537_s15, %s1023_s18  ;;  %p1114_p12 = scmp.ne.s32.totalorder %s1542_s17, 0  ;;  %s1027_s28 = scalar_lea.hbm %s1595_s11, %s1385_s30 }
 0x40b   : > { %s1029_s26 = sshll.u32 %s394_s14, 4  ;;  %s1272_s13 = smov [#allocation3]   ;;  %s1030_s26 = int_to_ptr.vmem [resolvable:$true] %s1029_s26 }
 0x40c   : > { %s1208_s10 = scalar_lea.vmem %s1030_s26, %s1542_s17  ;;  %s1212_s12 = sshll.u32 %s1272_s13, 4  ;;  %s1213_s12 = int_to_ptr.vmem [resolvable:$false] %s1212_s12 }
 0x40d   : > { %p1209_p13 = scmp.ne.s32.totalorder %s1030_s26, %s1208_s10  ;;  %s1214_s27 = scalar_lea.vmem %s1213_s12, 64 }
 0x40e   : > { %p1215_p2 = scmp.lt.s32.totalorder %s1030_s26, %s1213_s12  ;;  %p1216_p3 = scmp.lt.s32.totalorder %s1214_s27, %s1208_s10 }
 0x40f   : > { %p1210_p0 = pnand %p1209_p13, %p1114_p12 }
 0x410   : > { %p1217_p4 = por %p1216_p3, %p1215_p2 }
 0x411   : > { %p1211_p1 = pneg %p1210_p0 }
 0x413   : > { %p1218_p5 = pnand %p1217_p4, %p1211_p1 }
 0x415   : > { %1221 = shalt.err (!%p1218_p5)
}
 0x416   : > { %s1222_s16 = scalar_lea.hbm %s1027_s28, %s1542_s17  ;;  %s1226_s18 = scalar_lea.hbm %s1595_s11, 48 }
 0x417   : > { %p1223_p7 = scmp.ne.s32.totalorder %s1027_s28, %s1222_s16  ;;  %p1227_p10 = scmp.lt.s32.totalorder %s1027_s28, %s1595_s11 }
 0x418   : > { %p1228_p11 = scmp.lt.s32.totalorder %s1226_s18, %s1222_s16 }
 0x419   : > { %p1224_p8 = pnand %p1223_p7, %p1114_p12 }
 0x41a   : > { %p1229_p13 = por %p1228_p11, %p1227_p10 }
 0x41b   : > { %p1225_p9 = pneg %p1224_p8 }
 0x41d   : > { %p1230_p0 = pnand %p1229_p13, %p1225_p9 }
 0x41f   : > { %1233 = shalt.err (!%p1230_p0)
}
 0x420   : > { %1032 = dma.vmem_to_hbm [thread:$0]  (%p1114_p12), %s1030_s26, %s1542_s17, %s1027_s28, %s1537_s15  }
 0x421 PF: > { %p1156_p1 = scmp.ge.s32.totalorder %s1268_s22, 2  ;;  %s1041_s10 = sand.u32 1, %s1256_s19  }
 0x422   : > { %s1042_s13 = scalar_lea.sflag [#allocation4], %s1041_s10 }
 0x423   : > { %p1153_p2 = pnand %p1156_p1, %p1378_p6 }
 0x425   : > { %p1154_p3 = pneg %p1153_p2 }
 0x427   : > { %1251 = dma.done.wait (%p1154_p3), %s1042_s13, 32  }
 0x428   : > { %1253 = vsyncadd (%p1154_p3), %s1042_s13, 4294967264  ;;  %s1599_s12 = sld [smem:[#allocation6_spill]]  ;;  %p23_p4 = scmp.ge.s32.totalorder %s1361_s24, 4  }
 0x429   : > { %s1600_s19 = smov %s1260_s20  ;;  %s1601_s20 = smov %s1264_s21 }
 0x42a   : > { %s1603_s22 = smov %s1361_s24  ;;  %25 = sbr.rel (!%p23_p4) target bundleno = 6 (0x6), region = 99 }
 0x42e   : > { %s1602_s21 = smov %s1599_s12 }
 0x42f   :  { %1047 = vsyncpa [#allocation4], 1 }
 0x430   :  { %1049 = vsyncpa [#allocation4 + $0x1], 1 }

</bundles_post_ra>
